<compile_context>
chip_gen: v7x
topology: tpu7x:2x2x1
jax: 0.10.0
libtpu: 0.0.40
codegen_flags: <defaults>
</compile_context>

<pallas_src>
import numpy as np
import jax
import jax.numpy as jnp
from jax.experimental import pallas as pl
from jax.experimental.pallas import tpu as pltpu

_VMEM_LIMIT = 48 * 1024 * 1024   # generation-safe: < 64 MiB (v7x), << 128 MiB (v5e/v6e)


# ----------------------------------------------------------------------------
# Tiling helpers
# ----------------------------------------------------------------------------

def _pick_col_tile(hw_padded, nrows, itemsize):
    """Lane tile (multiple of 128 dividing hw_padded) for the (nrows, hw) blend layout.

    Targets ~4 MiB per in/out buffer (3 arrays x 2 pipeline buffers ~= 24 MiB total,
    v7x-safe with vmem_limit_bytes=48 MiB) and keeps >= 2 grid steps whenever possible
    so both v7x TensorCores get work under dimension_semantics=('parallel',)."""
    nblk = hw_padded // 128
    per_blk = max(1, nrows * 128 * itemsize)       # bytes per 128-lane block per buffer
    target = 4 << 20                               # ~4 MiB per buffer
    cap = max(1, min(nblk, target // per_blk))
    if nblk >= 2:
        cap = min(cap, max(1, nblk // 2))          # >= 2 grid steps (megacore)
    for d in range(cap, 0, -1):
        if nblk % d == 0:
            return d * 128
    return 128


def _pick_jpeg_row_tile(H, N):
    """Row-stripe height (multiple of 8 dividing H, <= 64) for the JPEG kernel.

    <= 64 keeps the resident kron(I, D) row matrix and per-plane flops small; when the
    batch is 1 we force >= 2 row stripes so both v7x TensorCores get work."""
    assert H % 8 == 0
    cap = 64 if (N >= 2 or H < 16) else min(64, H // 2)
    cap = max(8, cap - cap % 8)
    for th in range(cap, 7, -8):
        if H % th == 0:
            return th
    return 8


# ----------------------------------------------------------------------------
# Dropout: in-kernel hash mask, shared across batch & channels
# ----------------------------------------------------------------------------

def _dropout_kernel(sp_ref, noised_ref, cover_ref, out_ref):
    # sp_ref (SMEM int32[2]) = [seed, keep_threshold_23bit]
    # The keep mask is a function of the ABSOLUTE flat pixel index only, so every
    # (n, c) image sees the SAME (H, W) dropout pattern (HiDDeN semantics) and the
    # pattern is independent of the tile size chosen by _pick_col_tile.
    cols = out_ref.shape[1]
    flat = (pl.program_id(0) * cols
            + jax.lax.broadcasted_iota(jnp.int32, (1, cols), 1))
    # lowbias32-style integer hash (pure VPU: mul/xor/shift) -- no pltpu.prng_*.
    x = (flat + sp_ref[0] * (-1640531527)).astype(jnp.uint32)   # seed * golden ratio
    x = x ^ (x >> 16)
    x = x * jnp.uint32(0x7FEB352D)
    x = x ^ (x >> 15)
    x = x * jnp.uint32(0x846CA68B)
    x = x ^ (x >> 16)
    r23 = (x & jnp.uint32(0x7FFFFF)).astype(jnp.int32)          # uniform in [0, 2^23)
    keep_mask = r23 < sp_ref[1]                                  # P(keep) = thr / 2^23
    out_ref[...] = jnp.where(keep_mask, noised_ref[...],
                             cover_ref[...]).astype(out_ref.dtype)


# ----------------------------------------------------------------------------
# Cropout: rectangle select, lane-dense layout, single vselect
# ----------------------------------------------------------------------------

def _make_cropout_kernel(W):
    def kernel(rect_ref, noised_ref, cover_ref, out_ref):
        # rect_ref (SMEM int32[4]) = [h_start, h_end, w_start, w_end]
        cols = out_ref.shape[1]
        flat = pl.program_id(0) * cols + jax.lax.broadcasted_iota(
            jnp.int32, (1, cols), 1)
        h = flat // W
        w = flat - h * W
        inside = ((h >= rect_ref[0]) & (h < rect_ref[1]) &
                  (w >= rect_ref[2]) & (w < rect_ref[3]))
        out_ref[...] = jnp.where(inside, noised_ref[...],
                                 cover_ref[...]).astype(out_ref.dtype)
    return kernel


# ----------------------------------------------------------------------------
# Shared blend wrapper (dropout / cropout): lane-dense (N*C, H*W) layout
# ----------------------------------------------------------------------------

def _blend_call(kernel, scalars, noised, cover):
    N, C, H, W = noised.shape
    R, HW = N * C, H * W
    x = noised.reshape(R, HW)
    y = cover.reshape(R, HW)
    pad = (-HW) % 128
    if pad:
        # Pad the lane axis to a multiple of 128 so every store is an unmasked vst.
        x = jnp.pad(x, ((0, 0), (0, pad)))
        y = jnp.pad(y, ((0, 0), (0, pad)))
    hwp = HW + pad
    tc = _pick_col_tile(hwp, R, noised.dtype.itemsize)
    grid = hwp // tc
    out2d = pl.pallas_call(
        kernel,
        out_shape=jax.ShapeDtypeStruct((R, hwp), noised.dtype),
        grid_spec=pltpu.PrefetchScalarGridSpec(
            num_scalar_prefetch=1,
            grid=(grid,),
            in_specs=[pl.BlockSpec((R, tc), lambda j, s: (0, j)),
                      pl.BlockSpec((R, tc), lambda j, s: (0, j))],
            out_specs=pl.BlockSpec((R, tc), lambda j, s: (0, j)),
        ),
        compiler_params=pltpu.CompilerParams(
            dimension_semantics=("parallel",),
            vmem_limit_bytes=_VMEM_LIMIT),
    )(scalars, x, y)
    if pad:
        out2d = out2d[:, :HW]
    return out2d.reshape(N, C, H, W)


def dropout_blend(noised, cover, seed, keep):
    thr = int(min(max(round(float(keep) * (1 << 23)), 0), 1 << 23))
    sp = jnp.asarray([int(seed) & 0x7FFFFFFF, thr], jnp.int32)
    return _blend_call(_dropout_kernel, sp, noised, cover)


def cropout_blend(noised, cover, rect_i32):
    W = noised.shape[3]
    return _blend_call(_make_cropout_kernel(W),
                       jnp.asarray(rect_i32, jnp.int32), noised, cover)


# ----------------------------------------------------------------------------
# JpegCompression: separable block-DCT directly on NCHW row stripes (2 HBM passes)
# ----------------------------------------------------------------------------

def _jpeg_kernel(x_ref, ar_ref, art_ref, awt_ref, aw_ref, mask_ref, o_ref):
    f32 = jnp.float32
    r = x_ref[0, 0].astype(f32)
    g = x_ref[0, 1].astype(f32)
    b = x_ref[0, 2].astype(f32)
    # RGB -> YUV (elementwise, VPU)
    y = 0.299 * r + 0.587 * g + 0.114 * b
    u = -0.14713 * r - 0.28886 * g + 0.436 * b
    v = 0.615 * r - 0.51499 * g - 0.10001 * b
    ar, art = ar_ref[...], art_ref[...]          # kron(I, D), kron(I, D)^T   (th, th)
    awt, aw = awt_ref[...], aw_ref[...]          # kron(I, D)^T, kron(I, D)   (W, W)

    def jpeg_plane(p, m):
        # block DCT -> zig-zag coefficient keep mask -> block IDCT (all MXU / VPU)
        # TODO(synk): on v5e, bf16 matmul operands (f32 accumulation) would restore the
        # native MXU path; kept f32 here to stay within the reference tolerance.
        coef = jnp.dot(jnp.dot(ar, p, preferred_element_type=f32), awt,
                       preferred_element_type=f32) * m
        return jnp.dot(jnp.dot(art, coef, preferred_element_type=f32), aw,
                       preferred_element_type=f32)

    y2 = jpeg_plane(y, mask_ref[0])
    u2 = jpeg_plane(u, mask_ref[1])
    v2 = jpeg_plane(v, mask_ref[2])
    # YUV -> RGB (elementwise)
    o_ref[0, 0] = (y2 + 1.13983 * v2).astype(o_ref.dtype)
    o_ref[0, 1] = (y2 - 0.39465 * u2 - 0.58060 * v2).astype(o_ref.dtype)
    o_ref[0, 2] = (y2 + 2.03211 * u2).astype(o_ref.dtype)


def jpeg_compress(img, yuv_keep=(25, 9, 9)):
    N, C, H, W = img.shape
    assert C == 3 and H % 8 == 0 and W % 8 == 0
    # TODO(synk): images whose H/W are not multiples of 8 would need a zero-pad/unpad path.
    th = _pick_jpeg_row_tile(H, N)
    D = dct_matrix(8)
    ar = np.kron(np.eye(th // 8), D).astype(np.float32)      # block DCT along rows
    aw = np.kron(np.eye(W // 8), D).astype(np.float32)       # block DCT along cols
    mask = np.stack([np.tile(zigzag_keep_mask(k), (th // 8, W // 8))
                     for k in yuv_keep]).astype(np.float32)   # (3, th, W)
    return pl.pallas_call(
        _jpeg_kernel,
        out_shape=jax.ShapeDtypeStruct((N, 3, H, W), img.dtype),
        grid=(N, H // th),
        in_specs=[
            pl.BlockSpec((1, 3, th, W), lambda n, r: (n, 0, r, 0)),   # image stripe
            pl.BlockSpec((th, th), lambda n, r: (0, 0)),              # kron(I, D)
            pl.BlockSpec((th, th), lambda n, r: (0, 0)),              # kron(I, D)^T
            pl.BlockSpec((W, W), lambda n, r: (0, 0)),                # kron(I, D)^T
            pl.BlockSpec((W, W), lambda n, r: (0, 0)),                # kron(I, D)
            pl.BlockSpec((3, th, W), lambda n, r: (0, 0, 0)),         # zig-zag masks
        ],
        out_specs=pl.BlockSpec((1, 3, th, W), lambda n, r: (n, 0, r, 0)),
        compiler_params=pltpu.CompilerParams(
            dimension_semantics=("parallel", "parallel"),
            vmem_limit_bytes=_VMEM_LIMIT),
    )(img, jnp.asarray(ar), jnp.asarray(ar.T), jnp.asarray(aw.T), jnp.asarray(aw),
      jnp.asarray(mask))


# ----------------------------------------------------------------------------
# Deterministic parameter construction (DCT basis, zigzag masks)
# ----------------------------------------------------------------------------

def dct_matrix(n=8):
    k = np.arange(n)[:, None].astype(np.float64)
    i = np.arange(n)[None, :].astype(np.float64)
    D = np.sqrt(2.0 / n) * np.cos(np.pi * (2 * i + 1) * k / (2 * n))
    D[0, :] = np.sqrt(1.0 / n)
    return D  # orthonormal DCT-II; equivalent to HiDDeN's dct/idct pair under a 0/1 mask


def zigzag_keep_mask(keep_count, window=8):
    order = sorted(((x, y) for x in range(window) for y in range(window)),
                   key=lambda p: (p[0] + p[1], -p[1] if (p[0] + p[1]) % 2 else p[1]))
    m = np.zeros((window, window), np.float32)
    for i, j in order[:keep_count]:
        m[i, j] = 1.0
    return m


def random_rectangle(rng, H, W, h_range, w_range):
    rh = int(np.rint(rng.uniform(*h_range) * H))
    rw = int(np.rint(rng.uniform(*w_range) * W))
    h0 = 0 if rh == H else int(rng.randint(0, H - rh))
    w0 = 0 if rw == W else int(rng.randint(0, W - rw))
    return h0, h0 + rh, w0, w0 + rw


# ----------------------------------------------------------------------------
# Noiser module (JAX/Pallas)
# ----------------------------------------------------------------------------

class Noiser:
    """Randomly applies one of [Identity, Dropout, Cropout, JpegCompression]."""

    def __init__(self, seed=0):
        self.rng = np.random.RandomState(seed)   # host-side randomness (mirrors np.random)
        self.dropout_keep = (0.3, 0.3)
        self.cropout_h = (0.25, 0.35)
        self.cropout_w = (0.25, 0.35)
        self.yuv_keep = (25, 9, 9)               # JPEG coefficients kept per Y/U/V channel

    def forward(self, encoded_and_cover, layer_idx=None):
        noised, cover = encoded_and_cover
        N, C, H, W = noised.shape
        if layer_idx is None:
            layer_idx = int(self.rng.randint(0, 4))  # np.random.choice over the first 4 layers
        if layer_idx == 0:  # Identity
            return [noised, cover]
        if layer_idx == 1:  # Dropout([0.3, 0.3])
            keep = float(self.rng.uniform(*self.dropout_keep))
            seed = int(self.rng.randint(0, 2 ** 31 - 1))
            return [dropout_blend(noised, cover, seed, keep), cover]
        if layer_idx == 2:  # Cropout([0.25, 0.35], [0.25, 0.35])
            rect = np.asarray(
                random_rectangle(self.rng, H, W, self.cropout_h, self.cropout_w), np.int32)
            return [cropout_blend(noised, cover, rect), cover]
        # JpegCompression
        return [jpeg_compress(noised, self.yuv_keep), cover]


# ----------------------------------------------------------------------------
# Pure-JAX reference for the JPEG branch (whole-image block-diagonal formulation)
# ----------------------------------------------------------------------------

def jpeg_reference(img, yuv_keep=(25, 9, 9)):
    N, C, H, W = img.shape
    D = dct_matrix(8)
    A_h = jnp.asarray(np.kron(np.eye(H // 8), D), jnp.float32)
    A_w = jnp.asarray(np.kron(np.eye(W // 8), D), jnp.float32)
    mask3 = jnp.asarray(np.stack([np.tile(zigzag_keep_mask(k), (H // 8, W // 8))
                                  for k in yuv_keep]), jnp.float32)
    r, g, b = img[:, 0], img[:, 1], img[:, 2]
    y = 0.299 * r + 0.587 * g + 0.114 * b
    u = -0.14713 * r - 0.28886 * g + 0.436 * b
    v = 0.615 * r - 0.51499 * g - 0.10001 * b
    yuv = jnp.stack([y, u, v], axis=1)
    hi = jax.lax.Precision.HIGHEST
    coef = jnp.einsum('ij,ncjk,lk->ncil', A_h, yuv, A_w, precision=hi) * mask3[None]
    rec = jnp.einsum('ji,ncjk,kl->ncil', A_h, coef, A_w, precision=hi)
    y2, u2, v2 = rec[:, 0], rec[:, 1], rec[:, 2]
    return jnp.stack([y2 + 1.13983 * v2,
                      y2 - 0.39465 * u2 - 0.58060 * v2,
                      y2 + 2.03211 * u2], axis=1)


if __name__ == "__main__":
    N, C, H, W = 2, 3, 16, 16
    key = jax.random.PRNGKey(0)
    k1, k2 = jax.random.split(key)
    encoded = jax.random.normal(k1, (N, C, H, W), jnp.float32)
    cover = jax.random.normal(k2, (N, C, H, W), jnp.float32)

    noiser = Noiser(seed=0)

    # Actual Noiser forward (random choice among the first four layers).
    out = noiser.forward([encoded, cover])
    jax.block_until_ready(out[0])
    assert out[0].shape == (N, C, H, W) and out[1].shape == (N, C, H, W)

    enc_np = np.asarray(encoded)
    cov_np = np.asarray(cover)

    # --- Dropout branch ---
    got = np.asarray(dropout_blend(encoded, cover, seed=123, keep=0.3))
    # infer mask from (batch 0, channel 0); it must be shared across all (n, c)
    m = np.isclose(got[0, 0], enc_np[0, 0])
    ref = np.where(m, enc_np, cov_np)
    np.testing.assert_allclose(got, ref, atol=1e-6)
    assert 0.05 < m.mean() < 0.6
    # deterministic endpoints: keep=1 -> all noised, keep=0 -> all cover
    np.testing.assert_array_equal(np.asarray(dropout_blend(encoded, cover, 7, 1.0)), enc_np)
    np.testing.assert_array_equal(np.asarray(dropout_blend(encoded, cover, 7, 0.0)), cov_np)

    # --- Cropout branch ---
    rect = np.array([3, 8, 4, 10], np.int32)
    got = np.asarray(cropout_blend(encoded, cover, rect))
    rows_i = np.arange(H)[:, None]
    cols_i = np.arange(W)[None, :]
    inside = (rows_i >= 3) & (rows_i < 8) & (cols_i >= 4) & (cols_i < 10)
    ref = np.where(inside, enc_np, cov_np)
    np.testing.assert_allclose(got, ref, atol=1e-6)

    # --- JpegCompression branch ---
    got = jpeg_compress(encoded, noiser.yuv_keep)
    ref = jpeg_reference(encoded, noiser.yuv_keep)
    np.testing.assert_allclose(np.asarray(got), np.asarray(ref), atol=5e-3, rtol=5e-3)

    jax.block_until_ready(got)
    print("KERNEL_OK")
</pallas_src>

<mosaic_0001>
module attributes {stable_mosaic.version = 11 : i64} {
  func.func @_dropout_kernel(%arg0: i32, %arg1: memref<2xi32, #tpu.memory_space<smem>>, %arg2: memref<6x128xf32, #tpu.memory_space<vmem>>, %arg3: memref<6x128xf32, #tpu.memory_space<vmem>>, %arg4: memref<6x128xf32, #tpu.memory_space<vmem>>) attributes {dimension_semantics = [#tpu.dimension_semantics<parallel>], iteration_bounds = array<i64: 2>, scalar_prefetch = 1 : i64, scratch_operands = 0 : i64, tpu.core_type = #tpu.core_type<tc>, window_params = [{transform_indices = @transform_0, window_bounds = array<i64: 6, 128>}, {transform_indices = @transform_1, window_bounds = array<i64: 6, 128>}, {transform_indices = @transform_2, window_bounds = array<i64: 6, 128>}]} {
    %c128_i32 = arith.constant 128 : i32
    %0 = arith.muli %arg0, %c128_i32 : i32
    %1 = tpu.iota {dimensions = array<i32: 1>} : vector<1x128xi32>
    %2 = vector.broadcast %0 : i32 to vector<1x128xi32>
    %3 = arith.addi %2, %1 : vector<1x128xi32>
    %c0 = arith.constant 0 : index
    %4 = memref.load %arg1[%c0] : memref<2xi32, #tpu.memory_space<smem>>
    %c-1640531527_i32 = arith.constant -1640531527 : i32
    %5 = arith.muli %4, %c-1640531527_i32 : i32
    %6 = vector.broadcast %5 : i32 to vector<1x128xi32>
    %7 = arith.addi %3, %6 : vector<1x128xi32>
    %c16_i32 = arith.constant 16 : i32
    %8 = vector.broadcast %c16_i32 : i32 to vector<1x128xi32>
    %9 = arith.shrui %7, %8 : vector<1x128xi32>
    %10 = arith.xori %7, %9 : vector<1x128xi32>
    %c2146121005_i32 = arith.constant 2146121005 : i32
    %11 = vector.broadcast %c2146121005_i32 : i32 to vector<1x128xi32>
    %12 = arith.muli %10, %11 : vector<1x128xi32>
    %c15_i32 = arith.constant 15 : i32
    %13 = vector.broadcast %c15_i32 : i32 to vector<1x128xi32>
    %14 = arith.shrui %12, %13 : vector<1x128xi32>
    %15 = arith.xori %12, %14 : vector<1x128xi32>
    %c-2073254261_i32 = arith.constant -2073254261 : i32
    %16 = vector.broadcast %c-2073254261_i32 : i32 to vector<1x128xi32>
    %17 = arith.muli %15, %16 : vector<1x128xi32>
    %c16_i32_0 = arith.constant 16 : i32
    %18 = vector.broadcast %c16_i32_0 : i32 to vector<1x128xi32>
    %19 = arith.shrui %17, %18 : vector<1x128xi32>
    %20 = arith.xori %17, %19 : vector<1x128xi32>
    %c8388607_i32 = arith.constant 8388607 : i32
    %21 = vector.broadcast %c8388607_i32 : i32 to vector<1x128xi32>
    %22 = arith.andi %20, %21 : vector<1x128xi32>
    %c1 = arith.constant 1 : index
    %23 = memref.load %arg1[%c1] : memref<2xi32, #tpu.memory_space<smem>>
    %24 = vector.broadcast %23 : i32 to vector<1x128xi32>
    %25 = arith.cmpi slt, %22, %24 : vector<1x128xi32>
    %c0_1 = arith.constant 0 : index
    %c0_2 = arith.constant 0 : index
    %26 = vector.load %arg2[%c0_1, %c0_2] : memref<6x128xf32, #tpu.memory_space<vmem>>, vector<6x128xf32>
    %c0_3 = arith.constant 0 : index
    %c0_4 = arith.constant 0 : index
    %27 = vector.load %arg3[%c0_3, %c0_4] : memref<6x128xf32, #tpu.memory_space<vmem>>, vector<6x128xf32>
    %28 = vector.shape_cast %25 : vector<1x128xi1> to vector<1x128xi1>
    %29 = vector.broadcast %28 : vector<1x128xi1> to vector<6x128xi1>
    %30 = arith.select %29, %26, %27 : vector<6x128xi1>, vector<6x128xf32>
    %c0_5 = arith.constant 0 : index
    %c0_6 = arith.constant 0 : index
    %31 = vector.load %arg4[%c0_5, %c0_6] : memref<6x128xf32, #tpu.memory_space<vmem>>, vector<6x128xf32>
    tpu.vector_store %arg4[%c0_5, %c0_6], %30 {strides = array<i32>} : memref<6x128xf32, #tpu.memory_space<vmem>>, vector<6x128xf32>,
    return
  }
  func.func @transform_0(%arg0: i32, %arg1: memref<2xi32, #tpu.memory_space<smem>>) -> (i32, i32) {
    %c0_i32 = arith.constant 0 : i32
    %c0_i32_0 = arith.constant 0 : i32
    return %c0_i32, %arg0 : i32, i32
  }
  func.func @transform_1(%arg0: i32, %arg1: memref<2xi32, #tpu.memory_space<smem>>) -> (i32, i32) {
    %c0_i32 = arith.constant 0 : i32
    %c0_i32_0 = arith.constant 0 : i32
    return %c0_i32, %arg0 : i32, i32
  }
  func.func @transform_2(%arg0: i32, %arg1: memref<2xi32, #tpu.memory_space<smem>>) -> (i32, i32) {
    %c0_i32 = arith.constant 0 : i32
    %c0_i32_0 = arith.constant 0 : i32
    return %c0_i32, %arg0 : i32, i32
  }
}

</mosaic_0001>

<bundles_post_ra>
// kernel: tpu_custom_call.1
= control target key start
LH: loop header
LB: loop body
LE: loop exit
PB: predicated region body
PF: predicated region fallthrough
CT: control target
= control target key end

     0   :  { %s798_s0 = inlined_call_operand.hbm [shape: s32[2], index: 0, kind: input, shape index: {}]   ;;  %s799_s1 = inlined_call_operand.hbm [shape: f32[6,256], index: 1, kind: input, shape index: {}]   ;;  %s800_s2 = inlined_call_operand.hbm [shape: f32[6,256], index: 2, kind: input, shape index: {}]   ;;  %s801_s3 = inlined_call_operand.hbm [shape: f32[6,256], index: 3, kind: output, shape index: {}]  }
   0x1   :  { %s404_s14 = scalar_lea.hbm %s798_s0, 16 }
   0x2   :  { %p405_p0 = scmp.ne.s32.totalorder %s798_s0, %s404_s14  ;;  %p408_p1 = scmp.lt.u32.totalorder %s404_s14, %s798_s0 }
   0x4   :  { %p410_p2 = pnand %p408_p1, %p405_p0 }
   0x6   :  { %413 = shalt.err (!%p410_p2)  }
   0x7   :  { %s548_s19 = smov [#allocation3]  }
   0x8   :  { %9 = dma.hbm_to_smem %s798_s0, 16, %s548_s19, [#allocation2] }
   0x9   :  { %518 = dma.done.wait [#allocation2], 16 }
   0xa   :  { %519 = vsyncadd [#allocation2], 4294967280 }
   0xb   :  { %11 = sfence }
   0xc   :  { %12 = vsyncpa [#allocation5], 0 }
   0xd   :  { %14 = vsyncpa [#allocation5 + $0x1], 0 }
   0xe   :  { %15 = vsyncpa [#allocation8], 0 }
   0xf   :  { %17 = vsyncpa [#allocation8 + $0x1], 0 }
  0x10   :  { %18 = vsyncpa [#allocation6], 0 }
  0x11   :  { %20 = vsyncpa [#allocation6 + $0x1], 0  ;;  %s584_s22 = smov 0   ;;  %s586_s23 = smov 0  }
  0x12   :  { %s588_s24 = smov 0   ;;  %s590_s25 = smov 0  }
  0x13 LB: > { %s605_s0 = sadd.s32 4294967295, %s546_s25   ;;  %s335_s26 = sadd.s32 4294967294, %s546_s25   ;;  %s546_s25 = sphi %s590_s25, %s820_s25   ;;  %s542_s24 = sphi %s588_s24, %s819_s24   ;;  %s538_s23 = sphi %s586_s23, %s818_s23   ;;  %s534_s22 = sphi %s584_s22, %s817_s22  }
  0x14   : > { %s609_s27 = sadd.s32 1, %s546_s25   ;;  %s33_s28 = sadd.s32 1, %s542_s24 }
  0x15   : > { %s30_s29 = ssub.s32 %s546_s25, %s609_s27  ;;  %p40_p3 = scmp.ne.s32.totalorder %s542_s24, %s538_s23 }
  0x16   : > { %p31_p4 = scmp.eq.s32.totalorder %s30_s29, 0  ;;  %p41_p5 = scmp.eq.s32.totalorder %s546_s25, 0 }
  0x17   : > { %p46_p6 = scmp.ne.s32.totalorder %s538_s23, %s534_s22  ;;  %p47_p7 = scmp.eq.s32.totalorder %s605_s0, 0 }
  0x18   : > { %s621_s30 = scalar_select %p31_p4, %s542_s24, %s33_s28  }
  0x19   : > { %p623_p8 = por %p41_p5, %p40_p3  ;;  %p627_p9 = por %p47_p7, %p46_p6 }
  0x1a   : > { %p96_p10 = scmp.eq.s32.totalorder %s605_s0, 1  ;;  %p102_p11 = scmp.eq.s32.totalorder %s335_s26, 1 }
  0x1b   : > { %s805_s5 = scalar_select %p627_p9, 1, 0 }
  0x1c   : > { %p369_p13 = scmp.lt.s32.totalorder %s546_s25, 2  ;;  %p634_p0 = por %p96_p10, %p40_p3 }
  0x1d   : > { %p638_p1 = por %p102_p11, %p46_p6  ;;  %s643_s8 = sand.u32 1, %s542_s24  }
  0x1e   : > { %s806_s6 = scalar_select %p634_p0, 1, 0 }
  0x1f   : > { %s807_s7 = scalar_select %p638_p1, 1, 0 }
  0x20   : > { %s339_s9 = sshll.u32 %s546_s25, 7  ;;  %s338_s10 = sshll.u32 %s643_s8, 3 }
  0x21   : > { %s652_s13 = scalar_lea.hbm %s799_s1, %s339_s9  ;;  %s126_s14 = scalar_lea.vmem [#allocation4], %s338_s10 }
  0x22   : > { %s133_s15 = sshll.u32 %s126_s14, 4  ;;  %p658_p2 = pnand %p369_p13, %p623_p8  ;;  %s662_s15 = int_to_ptr.vmem [resolvable:$true] %s133_s15 }
  0x23   : > { %s123_s17 = scalar_lea.sflag [#allocation5], %s643_s8  ;;  %s414_s18 = scalar_lea.hbm %s652_s13, 128 }
  0x24   : > { %p415_p5 = scmp.ne.s32.totalorder %s652_s13, %s414_s18  ;;  %p416_p6 = pneg %p658_p2 }
  0x25   : > { %s419_s21 = scalar_lea.hbm %s799_s1, 256  ;;  %p420_p8 = scmp.lt.u32.totalorder %s652_s13, %s799_s1 }
  0x26   : > { %p417_p7 = pnand %p416_p6, %p415_p5  ;;  %p421_p11 = scmp.lt.u32.totalorder %s419_s21, %s414_s18 }
  0x27   : > { %p423_p12 = scmp.lt.u32.totalorder %s414_s18, %s652_s13 }
  0x28   : > { %p418_p10 = pneg %p417_p7  ;;  %p422_p13 = por %p421_p11, %p420_p8 }
  0x2a   : > { %p424_p3 = por %p423_p12, %p422_p13 }
  0x2c   : > { %p425_p4 = pnand %p424_p3, %p418_p10 }
  0x2e   : > { %428 = shalt.err (!%p425_p4)
}
  0x2f   : > { %s429_s29 = scalar_lea.vmem %s662_s15, 128  ;;  %s549_s4 = smov [#allocation4]  }
  0x30   : > { %p430_p5 = scmp.ne.s32.totalorder %s662_s15, %s429_s29  ;;  %s434_s11 = sshll.u32 %s549_s4, 4  ;;  %s435_s11 = int_to_ptr.vmem [resolvable:$false] %s434_s11 }
  0x31   : > { %s436_s12 = scalar_lea.vmem %s435_s11, 256  ;;  %p437_p0 = scmp.lt.s32.totalorder %s662_s15, %s435_s11 }
  0x32   : > { %p432_p7 = pnand %p430_p5, %p416_p6  ;;  %p438_p8 = scmp.lt.s32.totalorder %s436_s12, %s429_s29 }
  0x34   : > { %p433_p1 = pneg %p432_p7  ;;  %p439_p11 = por %p438_p8, %p437_p0 }
  0x36   : > { %p440_p12 = pnand %p439_p11, %p433_p1 }
  0x38   : > { %443 = shalt.err (!%p440_p12)
}
  0x39   : > { %361 = dma.hbm_to_vmem [thread:$0]  (!%p658_p2), %s652_s13, 128, %s662_s15, %s123_s17  }
  0x3a   : > { %p809_p3 = scmp.lt.s32.totalorder %s546_s25, 3  ;;  %p810_p4 = scmp.ge.s32.totalorder %s546_s25, 1 }
  0x3b   : > { %s705_s20 = scalar_lea.hbm %s800_s2, %s339_s9  ;;  %s144_s21 = scalar_lea.vmem [#allocation7], %s338_s10 }
  0x3c   : > { %p696_p10 = pnand %p810_p4, %p809_p3  ;;  %s151_s26 = sshll.u32 %s144_s21, 4  ;;  %s152_s26 = int_to_ptr.vmem [resolvable:$true] %s151_s26 }
  0x3d   : > { %s141_s13 = scalar_lea.sflag [#allocation8], %s643_s8  ;;  %s444_s15 = scalar_lea.hbm %s705_s20, 128 }
  0x3e   : > { %s811_s14 = scalar_select %p696_p10, 1, 0 }
  0x3f   : > { %p445_p0 = scmp.ne.s32.totalorder %s705_s20, %s444_s15  ;;  %s449_s9 = scalar_lea.hbm %s800_s2, 256 }
  0x40   : > { %p450_p5 = scmp.lt.u32.totalorder %s705_s20, %s800_s2  ;;  %p451_p7 = scmp.lt.u32.totalorder %s449_s9, %s444_s15 }
  0x41   : > { %p447_p1 = pnand %p445_p0, %p416_p6  ;;  %p453_p11 = scmp.lt.u32.totalorder %s444_s15, %s705_s20 }
  0x42   : > { %p452_p8 = por %p451_p7, %p450_p5 }
  0x43   : > { %p448_p13 = pneg %p447_p1 }
  0x44   : > { %p454_p12 = por %p453_p11, %p452_p8 }
  0x46   : > { %p455_p3 = pnand %p454_p12, %p448_p13 }
  0x48   : > { %458 = shalt.err (!%p455_p3)
}
  0x49   : > { %s459_s8 = scalar_lea.vmem %s152_s26, 128  ;;  %s550_s10 = smov [#allocation7]  }
  0x4a   : > { %p460_p4 = scmp.ne.s32.totalorder %s152_s26, %s459_s8  ;;  %s464_s11 = sshll.u32 %s550_s10, 4  ;;  %s465_s11 = int_to_ptr.vmem [resolvable:$false] %s464_s11 }
  0x4b   : > { %s466_s12 = scalar_lea.vmem %s465_s11, 256  ;;  %p467_p9 = scmp.lt.s32.totalorder %s152_s26, %s465_s11 }
  0x4c   : > { %p462_p0 = pnand %p460_p4, %p416_p6  ;;  %p468_p10 = scmp.lt.s32.totalorder %s466_s12, %s459_s8 }
  0x4e   : > { %p463_p1 = pneg %p462_p0  ;;  %p469_p5 = por %p468_p10, %p467_p9 }
  0x50   : > { %p470_p7 = pnand %p469_p5, %p463_p1 }
  0x52   : > { %473 = shalt.err (!%p470_p7)
}
  0x53   : > { %364 = dma.hbm_to_vmem [thread:$0]  (!%p658_p2), %s705_s20, 128, %s152_s26, %s141_s13  }
  0x54   : > { %p812_p13 = scmp.ne.s32.totalorder %s811_s14, 0 }
  0x55   : > { %s732_s18 = sand.u32 (!%p812_p13), 1, %s538_s23   ;;  %p813_p9 = scmp.ne.s32.totalorder (!%p812_p13), %s805_s5, 0 }
  0x56   : > { %160 = sbr.rel (%p812_p13) target bundleno = 141 (0x8d), region = 28  ;;  %s735_s19 = sshll.u32 (!%p812_p13), %s732_s18, 3 }
  0x57   : > { %s163_s21 = scalar_lea.sflag (!%p812_p13), [#allocation5], %s732_s18  ;;  %s166_s15 = scalar_lea.vmem (!%p812_p13), [#allocation4], %s735_s19 }
  0x5d   : > { %521 = dma.done.wait (%p813_p9), %s163_s21, 128  }
  0x5e   : > { %523 = vsyncadd (%p813_p9), %s163_s21, 4294967168  ;;  %s172_s16 = scalar_lea.sflag [#allocation8], %s732_s18  ;;  %s175_s14 = scalar_lea.vmem [#allocation7], %s735_s19 }
  0x5f   : > { %525 = dma.done.wait (%p813_p9), %s172_s16, 128  }
  0x60   : > { %527 = vsyncadd (%p813_p9), %s172_s16, 4294967168  ;;  %s346_s20 = sshll.u32 %s605_s0, 7  ;;  %v202_v0 = vlaneseq  ;;  %s206_s26 = sld [smem:[#allocation3]]  ;;  %v222_v16 = vld [vmem:[%s166_s15] sm:$0x3f] }
  0x61   : > { %v204_v2 = vstv %s346_s20  ;;  %s347_s17 = sld [smem:[#allocation3 + $0x1]]  ;;  %s200_s0 = scalar_lea.vmem [#allocation9], %s735_s19  ;;  %v223_v17 = vld [vmem:[%s175_s14] sm:$0x3f] }
  0x62   : > { %v203_v1 = vand.u32 127, %v202_v0  ;;  %s242_s5 = sshll.u32 %s200_s0, 4  ;;  %s756_s29 = scalar_lea.hbm %s801_s3, %s346_s20  ;;  %s751_s5 = int_to_ptr.vmem [resolvable:$true] %s242_s5 }
  0x63   : > { %s229_s4 = scalar_lea.sflag [#allocation6], %s732_s18  ;;  %s474_s8 = scalar_lea.vmem %s751_s5, 128 }
  0x64   : > { %v205_v3 = vadd.s32 %v204_v2, %v203_v1  ;;  %p475_p2 = scmp.ne.s32.totalorder %s751_s5, %s474_s8  ;;  %p814_p6 = scmp.ne.s32.totalorder %s806_s6, 0 }
  0x65   : > { %s551_s10 = smov [#allocation9]  }
  0x66   : > { %s207_s13 = smul.u32 2654435769, %s206_s26  ;;  %p476_p10 = pnand %p475_p2, %p814_p6 }
  0x67   : > { %v220_v14 = vstv %s347_s17  ;;  %s478_s11 = sshll.u32 %s551_s10, 4  ;;  %s479_s11 = int_to_ptr.vmem [resolvable:$false] %s478_s11 }
  0x68   : > { %v208_v4 = vstv %s207_s13  ;;  %p477_p8 = pneg %p476_p10  ;;  %s480_s12 = scalar_lea.vmem %s479_s11, 256 }
  0x69   : > { %v209_v5 = vadd.s32 %v208_v4, %v205_v3  ;;  %p481_p11 = scmp.lt.s32.totalorder %s751_s5, %s479_s11  ;;  %p482_p12 = scmp.lt.s32.totalorder %s480_s12, %s474_s8 }
  0x6b   : > { %v210_v6 = vshrl.u32 %v209_v5, 16  ;;  %p483_p3 = por %p482_p12, %p481_p11 }
  0x6d   : > { %v211_v7 = vxor.u32 %v210_v6, %v209_v5  ;;  %p484_p4 = pnand %p483_p3, %p477_p8 }
  0x6f   : > { %v212_v8 = vmul.u32 2146121005, %v211_v7 }
  0x71   : > { %v213_v9 = vshrl.u32 %v212_v8, 15 }
  0x73   : > { %v214_v10 = vxor.u32 %v213_v9, %v212_v8 }
  0x75   : > { %v215_v11 = vmul.u32 2221713035, %v214_v10 }
  0x77   : > { %v216_v12 = vshrl.u32 %v215_v11, 16 }
  0x79   : > { %v217_v13 = vxor.u32 %v216_v12, %v215_v11 }
  0x7b   : > { %v218_v15 = vand.u32 8388607, %v217_v13 }
  0x7d   : > { %vm221_vm0 = vcmp.lt.s32.totalorder %v218_v15, %v220_v14 }
  0x7e   : > { %v226_v18 = vsel %vm221_vm0, %v222_v16, %v223_v17 }
  0x7f   : > { %227 = vst [vmem:[%s200_s0] sm:$0x3f] %v226_v18 }
  0x80   : > { %487 = shalt.err (!%p484_p4)
}
  0x81   : > { %s488_s18 = scalar_lea.hbm %s756_s29, 128  ;;  %s492_s15 = scalar_lea.hbm %s801_s3, 256 }
  0x82   : > { %p489_p0 = scmp.ne.s32.totalorder %s756_s29, %s488_s18  ;;  %p493_p7 = scmp.lt.u32.totalorder %s756_s29, %s801_s3 }
  0x83   : > { %p494_p13 = scmp.lt.u32.totalorder %s492_s15, %s488_s18  ;;  %p496_p2 = scmp.lt.u32.totalorder %s488_s18, %s756_s29 }
  0x84   : > { %p490_p1 = pnand %p489_p0, %p814_p6 }
  0x85   : > { %p495_p9 = por %p494_p13, %p493_p7 }
  0x86   : > { %p491_p5 = pneg %p490_p1 }
  0x87   : > { %p497_p10 = por %p496_p2, %p495_p9 }
  0x89   : > { %p498_p8 = pnand %p497_p10, %p491_p5 }
  0x8b   : > { %501 = shalt.err (!%p498_p8)
}
  0x8c   : > { %356 = dma.vmem_to_hbm [thread:$0]  (%p814_p6), %s751_s5, 128, %s756_s29, %s229_s4  }
  0x8d PF: > { %s254_s20 = sand.u32 1, %s534_s22   ;;  %p815_p11 = scmp.ne.s32.totalorder %s807_s7, 0 }
  0x8e   : > { %p816_p12 = scmp.ge.s32.totalorder %s546_s25, 2  ;;  %s255_s26 = scalar_lea.sflag [#allocation6], %s254_s20 }
  0x90   : > { %p366_p3 = pnand %p816_p12, %p815_p11 }
  0x92   : > { %529 = dma.done.wait (!%p366_p3), %s255_s26, 128  }
  0x93   : > { %531 = vsyncadd (!%p366_p3), %s255_s26, 4294967168  ;;  %p23_p4 = scmp.ge.s32.totalorder %s609_s27, 4   ;;  %s817_s22 = smov %s538_s23 }
  0x94   : > { %s818_s23 = smov %s542_s24  ;;  %s819_s24 = smov %s621_s30 }
  0x95   : > { %s820_s25 = smov %s609_s27  ;;  %25 = sbr.rel (!%p23_p4) target bundleno = 19 (0x13), region = 86 }
  0x9c   :  { %260 = vsyncpa [#allocation5], 1 }
  0x9d   :  { %262 = vsyncpa [#allocation5 + $0x1], 1 }
  0x9e   :  { %263 = vsyncpa [#allocation8], 1 }
  0x9f   :  { %265 = vsyncpa [#allocation8 + $0x1], 1 }
  0xa0   :  { %266 = vsyncpa [#allocation6], 1 }
  0xa1   :  { %268 = vsyncpa [#allocation6 + $0x1], 1 }

</bundles_post_ra>
